<compile_context>
chip_gen: v7x
topology: tpu7x:2x2x1
jax: 0.10.0
libtpu: 0.0.40
codegen_flags: <defaults>
</compile_context>

<pallas_src>
import math
import functools

import jax
import jax.numpy as jnp
from jax import lax
from jax.experimental import pallas as pl
from jax.experimental.pallas import tpu as pltpu


_PER_BUFFER_TARGET_BYTES = 8 * 1024 * 1024   # mem-bound sweet spot (4-8 MiB tiles)
_PE_RESIDENT_MAX_BYTES = 16 * 1024 * 1024    # keep pe fully resident below this
_MIN_COL_SPLIT_BYTES = 2 * 1024 * 1024       # only column-split reasonably big problems


def make_pos_encoding(embed_d: int, max_len: int) -> jnp.ndarray:
    """Deterministic sinusoidal table, identical to the PyTorch __init__."""
    positions = jnp.arange(max_len, dtype=jnp.float32)[:, None]            # (L, 1)
    division_term = jnp.exp(
        jnp.arange(0, embed_d, 2, dtype=jnp.float32) * (-math.log(10000.0) / embed_d)
    )                                                                       # (E/2,)
    pe = jnp.zeros((max_len, embed_d), dtype=jnp.float32)
    pe = pe.at[:, 0::2].set(jnp.sin(positions * division_term))
    pe = pe.at[:, 1::2].set(jnp.cos(positions * division_term))
    return pe                                                               # (L, E)


def _vmem_limit_bytes() -> int:
    """Generation-aware VMEM budget: ~3/4 of physical, capped at 96 MiB.

    v5e/v6e (128 MiB physical) -> 96 MiB; v7x (64 MiB physical) -> 48 MiB.
    Falls back to a v7x-safe 48 MiB when the query is unavailable.
    """
    cap = 64 * 1024 * 1024
    try:
        info = pltpu.get_tpu_info()
        cap = int(getattr(info, "vmem_capacity_bytes", cap) or cap)
    except Exception:
        pass
    return max(16 << 20, min((cap * 3) // 4, 96 << 20))


def _pos_enc_kernel(seed_ref, x_ref, pe_ref, o_ref, *,
                    groups: int, total_cols: int, pe_resident: bool,
                    keep_thresh: int, inv_keep: float, apply_dropout: bool):
    # x_ref / o_ref: (tS, tC) with tC = groups * E (lane-dense, batch flattened
    # into lanes).  pe_ref: resident (S_pad, E) or per-tile (tS, E).
    bS, bC = x_ref.shape

    if pe_resident:
        start = pl.program_id(0) * bS
        if bS % 8 == 0:
            start = pl.multiple_of(start, 8)
        pe_blk = pe_ref[pl.ds(start, bS), :]                 # (tS, E)
    else:
        pe_blk = pe_ref[...]                                 # (tS, E)

    if groups > 1:
        # Broadcast pe over the flattened batch groups.  Lane-aligned when
        # E % 128 == 0 (pure vreg placement); small lane shuffles otherwise.
        pe_blk = jnp.concatenate([pe_blk] * groups, axis=1)  # (tS, tC)

    y = x_ref[...] + pe_blk

    if apply_dropout:
        # Portable stateless Bernoulli mask: hash of (global element index,
        # seed).  Tiling-invariant; runs on TPU and in interpret mode.
        # TODO(synk): RNG stream differs from torch's nn.Dropout; statistics match.
        rows = lax.broadcasted_iota(jnp.int32, (bS, bC), 0).astype(jnp.uint32)
        cols = lax.broadcasted_iota(jnp.int32, (bS, bC), 1).astype(jnp.uint32)
        row0 = (pl.program_id(0) * bS).astype(jnp.uint32)
        col0 = (pl.program_id(1) * bC).astype(jnp.uint32)
        idx = (row0 + rows) * jnp.uint32(total_cols) + (col0 + cols)
        seed = seed_ref[0].astype(jnp.uint32)
        h = idx ^ (seed * jnp.uint32(0x9E3779B1) + jnp.uint32(0x7F4A7C15))
        h = h ^ (h >> 16)
        h = h * jnp.uint32(0x7FEB352D)
        h = h ^ (h >> 15)
        h = h * jnp.uint32(0x846CA68B)
        h = h ^ (h >> 16)
        keep = h >= jnp.uint32(keep_thresh)                  # P(keep) = 1 - p
        # Single select on a scalar-broadcast vector, then one multiply.
        scale = jnp.where(keep,
                          jnp.asarray(inv_keep, dtype=y.dtype),
                          jnp.asarray(0.0, dtype=y.dtype))
        y = y * scale

    o_ref[...] = y.astype(o_ref.dtype)


def positional_encoding_forward(token_embedding: jnp.ndarray,
                                pos_encoding: jnp.ndarray,
                                *,
                                dropout_p: float = 0.0,
                                training: bool = False,
                                seed: int = 0,
                                tile_rows: int | None = None,
                                tile_cols: int | None = None) -> jnp.ndarray:
    """token_embedding: (S, B, E) ; pos_encoding: (max_len, E).

    tile_rows / tile_cols are optional testing / tuning overrides.
    """
    S, B, E = token_embedding.shape
    dtype = token_embedding.dtype
    itemsize = int(jnp.dtype(dtype).itemsize)
    C = B * E

    pe = pos_encoding[:S].astype(dtype)                       # (S, E) — never tiled by B

    p = float(dropout_p)
    apply_dropout = bool(training) and p > 0.0
    keep_thresh = min(int(p * 4294967296.0), 4294967295)
    inv_keep = (1.0 / (1.0 - p)) if p < 1.0 else 0.0

    vmem_limit = _vmem_limit_bytes()

    # pe stays VMEM-resident for the whole grid when small (DMA'd once).
    pe_resident = S * E * itemsize <= min(_PE_RESIDENT_MAX_BYTES, vmem_limit // 4)
    pe_bytes = S * E * itemsize if pe_resident else 0
    per_buf = min(_PER_BUFFER_TARGET_BYTES,
                  max(512 * 1024, (vmem_limit - pe_bytes - (2 << 20)) // 5))

    # ---- row (sequence) tiling -------------------------------------------
    row_bytes = C * itemsize
    tS = max(1, per_buf // max(1, row_bytes))
    tS = max(8, (tS // 8) * 8)
    if tS >= S:
        tS = S
    if tile_rows is not None:
        t = int(tile_rows)
        tS = S if t >= S else max(8, (t // 8) * 8)
    nS = pl.cdiv(S, tS)

    # ---- column tiling (whole batches only) -------------------------------
    # Restores pipelining / cross-TC sharding for short-S, large-B shapes.
    tC = C
    if nS == 1 and B > 1 and S * C * itemsize > _MIN_COL_SPLIT_BYTES:
        step = 128 // math.gcd(E, 128)            # smallest k with (k*E) % 128 == 0
        k_fit = max(1, per_buf // max(1, S * E * itemsize))
        k = max(1, min(max(1, B // 8), k_fit))
        k = (k // step) * step
        if 0 < k * E < C:
            tC = k * E
    if tile_cols is not None:
        t = (int(tile_cols) // E) * E
        if 0 < t < C and t % 128 == 0:
            tC = t
    nC = pl.cdiv(C, tC)
    groups = tC // E

    # Flatten batch into the lane axis (contiguous merge -> bitcast, no copy).
    x_in = token_embedding.reshape(S, C)

    if pe_resident:
        S_pad = nS * tS
        if S_pad > S:
            pe = jnp.pad(pe, ((0, S_pad - S), (0, 0)))        # tiny, avoids OOB slices
        pe_spec = pl.BlockSpec((S_pad, E), lambda i, j, s: (0, 0))   # loaded once
    else:
        pe_spec = pl.BlockSpec((tS, E), lambda i, j, s: (i, 0))

    x_spec = pl.BlockSpec((tS, tC), lambda i, j, s: (i, j))
    out_spec = pl.BlockSpec((tS, tC), lambda i, j, s: (i, j))

    kernel = functools.partial(
        _pos_enc_kernel,
        groups=groups, total_cols=C, pe_resident=pe_resident,
        keep_thresh=keep_thresh, inv_keep=inv_keep, apply_dropout=apply_dropout)

    grid_spec = pltpu.PrefetchScalarGridSpec(
        num_scalar_prefetch=1,                  # seed lives in SMEM
        grid=(nS, nC),
        in_specs=[x_spec, pe_spec],
        out_specs=out_spec)

    cost = pl.CostEstimate(
        flops=S * C * (4 if apply_dropout else 1),
        transcendentals=0,
        bytes_accessed=2 * S * C * itemsize + S * E * itemsize)

    # TODO(synk): on v7x, pltpu.CORE_PARALLEL (or pl.core_map) on the leading
    # axis would explicitly shard tiles across the two TensorCores.
    compiler_params = pltpu.CompilerParams(
        dimension_semantics=("parallel", "parallel"),
        vmem_limit_bytes=vmem_limit)

    out = pl.pallas_call(
        kernel,
        out_shape=jax.ShapeDtypeStruct((S, C), dtype),
        grid_spec=grid_spec,
        compiler_params=compiler_params,
        cost_estimate=cost,
    )(jnp.array([seed], dtype=jnp.int32), x_in, pe)
    return out.reshape(S, B, E)


if __name__ == "__main__":
    embed_d = 32
    max_len = 16
    dropout = 0.1          # module hyper-parameter
    seq_len = 8
    batch = 2

    key = jax.random.PRNGKey(0)
    k0, k1 = jax.random.split(key)
    x = jax.random.normal(k0, (seq_len, batch, embed_d), dtype=jnp.float32)
    pos_encoding = make_pos_encoding(embed_d, max_len)

    # --- Eval-mode forward (dropout is identity, matching nn.Dropout.eval()).
    out = positional_encoding_forward(x, pos_encoding, dropout_p=dropout, training=False)
    out = jax.block_until_ready(out)
    ref = x + pos_encoding[:seq_len][:, None, :]
    assert out.shape == x.shape and out.dtype == x.dtype
    assert jnp.allclose(out, ref, atol=1e-6, rtol=1e-6)

    # --- Training-mode forward (exercises the portable in-kernel dropout).
    out_tr = positional_encoding_forward(
        x, pos_encoding, dropout_p=dropout, training=True, seed=123)
    out_tr = jax.block_until_ready(out_tr)
    assert out_tr.shape == x.shape and bool(jnp.all(jnp.isfinite(out_tr)))
    scaled = ref * jnp.float32(1.0 / (1.0 - dropout))
    ok = jnp.isclose(out_tr, scaled, rtol=1e-4, atol=1e-5) | (out_tr == 0.0)
    assert bool(jnp.all(ok))
    drop_frac = float(jnp.mean((out_tr == 0.0).astype(jnp.float32)))
    assert 0.0 < drop_frac < 0.5

    # --- Tiled path: multi-row / multi-column grid, partial last row tile,
    #     resident-pe slicing at non-zero offsets, and in-kernel pe broadcast.
    S2, B2, E2 = 12, 8, 32
    pe2 = make_pos_encoding(E2, 16)
    x2 = jax.random.normal(k1, (S2, B2, E2), dtype=jnp.float32)
    ref2 = x2 + pe2[:S2][:, None, :]

    out2 = positional_encoding_forward(x2, pe2, dropout_p=dropout, training=False,
                                       tile_rows=8, tile_cols=128)
    out2 = jax.block_until_ready(out2)
    assert jnp.allclose(out2, ref2, atol=1e-6, rtol=1e-6)

    # Dropout mask is a function of (global index, seed) only -> the result is
    # identical regardless of tiling.
    tr_a = positional_encoding_forward(x2, pe2, dropout_p=dropout, training=True, seed=7)
    tr_b = positional_encoding_forward(x2, pe2, dropout_p=dropout, training=True, seed=7,
                                       tile_rows=8, tile_cols=128)
    tr_a, tr_b = jax.block_until_ready((tr_a, tr_b))
    assert jnp.allclose(tr_a, tr_b)
    ok2 = jnp.isclose(tr_a, ref2 * jnp.float32(1.0 / (1.0 - dropout)),
                      rtol=1e-4, atol=1e-5) | (tr_a == 0.0)
    assert bool(jnp.all(ok2))

    print("KERNEL_OK")
</pallas_src>

<mosaic_0001>
module attributes {stable_mosaic.version = 11 : i64} {
  func.func @_pos_enc_kernel(%arg0: i32, %arg1: i32, %arg2: memref<1xi32, #tpu.memory_space<smem>>, %arg3: memref<8x64xf32, #tpu.memory_space<vmem>>, %arg4: memref<8x32xf32, #tpu.memory_space<vmem>>, %arg5: memref<8x64xf32, #tpu.memory_space<vmem>>) attributes {dimension_semantics = [#tpu.dimension_semantics<parallel>, #tpu.dimension_semantics<parallel>], iteration_bounds = array<i64: 1, 1>, scalar_prefetch = 1 : i64, scratch_operands = 0 : i64, tpu.core_type = #tpu.core_type<tc>, window_params = [{transform_indices = @transform_0, window_bounds = array<i64: 8, 64>}, {pipeline_mode = #tpu.pipeline_mode<synchronous>, transform_indices = @transform_1, window_bounds = array<i64: 8, 32>}, {transform_indices = @transform_2, window_bounds = array<i64: 8, 64>}]} {
    %c8_i32 = arith.constant 8 : i32
    %0 = arith.muli %arg0, %c8_i32 : i32
    %1 = tpu.assume_multiple %0, 8 : i32
    %2 = arith.index_cast %1 : i32 to index
    %c0 = arith.constant 0 : index
    %3 = vector.load %arg4[%2, %c0] : memref<8x32xf32, #tpu.memory_space<vmem>>, vector<8x32xf32>
    %4 = tpu.concatenate %3, %3 in 1 : vector<8x32xf32>, vector<8x32xf32> -> vector<8x64xf32>
    %c0_0 = arith.constant 0 : index
    %c0_1 = arith.constant 0 : index
    %5 = vector.load %arg3[%c0_0, %c0_1] : memref<8x64xf32, #tpu.memory_space<vmem>>, vector<8x64xf32>
    %6 = arith.addf %5, %4 : vector<8x64xf32>
    %c0_2 = arith.constant 0 : index
    %c0_3 = arith.constant 0 : index
    %7 = vector.load %arg5[%c0_2, %c0_3] : memref<8x64xf32, #tpu.memory_space<vmem>>, vector<8x64xf32>
    tpu.vector_store %arg5[%c0_2, %c0_3], %6 {strides = array<i32>} : memref<8x64xf32, #tpu.memory_space<vmem>>, vector<8x64xf32>,
    return
  }
  func.func @transform_0(%arg0: i32, %arg1: i32, %arg2: memref<1xi32, #tpu.memory_space<smem>>) -> (i32, i32) {
    %c0_i32 = arith.constant 0 : i32
    return %arg0, %arg1 : i32, i32
  }
  func.func @transform_1(%arg0: i32, %arg1: i32, %arg2: memref<1xi32, #tpu.memory_space<smem>>) -> (i32, i32) {
    %c0_i32 = arith.constant 0 : i32
    %c0_i32_0 = arith.constant 0 : i32
    %c0_i32_1 = arith.constant 0 : i32
    return %c0_i32, %c0_i32_0 : i32, i32
  }
  func.func @transform_2(%arg0: i32, %arg1: i32, %arg2: memref<1xi32, #tpu.memory_space<smem>>) -> (i32, i32) {
    %c0_i32 = arith.constant 0 : i32
    return %arg0, %arg1 : i32, i32
  }
}

</mosaic_0001>

<bundles_post_ra>
// kernel: tpu_custom_call.1
= control target key start
LH: loop header
LB: loop body
LE: loop exit
PB: predicated region body
PF: predicated region fallthrough
CT: control target
= control target key end

     0   :  { %9 = vsyncpa [#allocation5], 0  ;;  %s203_s0 = inlined_call_operand.<no memory space> [shape: s32[1], index: 0, kind: input, shape index: {}]   ;;  %s204_s1 = inlined_call_operand.hbm [shape: f32[8,64], index: 1, kind: input, shape index: {}]   ;;  %s205_s2 = inlined_call_operand.hbm [shape: f32[8,32], index: 2, kind: input, shape index: {}]   ;;  %s206_s3 = inlined_call_operand.hbm [shape: f32[8,64], index: 3, kind: output, shape index: {}]  }
   0x1   :  { %10 = vsyncpa [#allocation8], 0 }
   0x2   :  { %11 = vsyncpa [#allocation6], 0  ;;  %s143_s12 = smov [#allocation4]   ;;  %s144_s14 = smov [#allocation7]  }
   0x3   :  { %s18_s13 = sshll.u32 %s143_s12, 4  ;;  %s28_s15 = sshll.u32 %s144_s14, 4  ;;  %s19_s13 = int_to_ptr.vmem [resolvable:$true] %s18_s13  ;;  %s29_s15 = int_to_ptr.vmem [resolvable:$true] %s28_s15 }
   0x4   :  { %s71_s17 = scalar_lea.hbm %s204_s1, 128 }
   0x5   :  { %p72_p0 = scmp.ne.s32.totalorder %s204_s1, %s71_s17  ;;  %p75_p1 = scmp.lt.u32.totalorder %s71_s17, %s204_s1 }
   0x7   :  { %p77_p2 = pnand %p75_p1, %p72_p0 }
   0x9   :  { %80 = shalt.err (!%p77_p2)
}
   0xa   :  { %s81_s22 = scalar_lea.vmem %s19_s13, 128  ;;  %p86_p4 = scmp.lt.s32.totalorder %s19_s13, %s19_s13 }
   0xb   :  { %p82_p3 = scmp.ne.s32.totalorder %s19_s13, %s81_s22  ;;  %p87_p5 = scmp.lt.s32.totalorder %s81_s22, %s81_s22 }
   0xd   :  { %p88_p6 = por %p87_p5, %p86_p4 }
   0xf   :  { %p89_p7 = pnand %p88_p6, %p82_p3 }
  0x11   :  { %92 = shalt.err (!%p89_p7)
}
  0x12   :  { %21 = dma.hbm_to_vmem [thread:$0]  %s204_s1, 128, %s19_s13, [#allocation5]  }
  0x13   :  { %s93_s27 = scalar_lea.hbm %s205_s2, 128 }
  0x14   :  { %p94_p8 = scmp.ne.s32.totalorder %s205_s2, %s93_s27  ;;  %p97_p9 = scmp.lt.u32.totalorder %s93_s27, %s205_s2 }
  0x16   :  { %p99_p10 = pnand %p97_p9, %p94_p8 }
  0x18   :  { %102 = shalt.err (!%p99_p10)
}
  0x19   :  { %s103_s5 = scalar_lea.vmem %s29_s15, 128  ;;  %p108_p12 = scmp.lt.s32.totalorder %s29_s15, %s29_s15 }
  0x1a   :  { %p104_p11 = scmp.ne.s32.totalorder %s29_s15, %s103_s5  ;;  %p109_p13 = scmp.lt.s32.totalorder %s103_s5, %s103_s5 }
  0x1c   :  { %p110_p0 = por %p109_p13, %p108_p12 }
  0x1e   :  { %p111_p1 = pnand %p110_p0, %p104_p11 }
  0x20   :  { %114 = shalt.err (!%p111_p1)
}
  0x21   :  { %31 = dma.hbm_to_vmem [thread:$0]  %s205_s2, 128, %s29_s15, [#allocation8]  }
  0x22   :  { %137 = dma.done.wait [#allocation5], 128  }
  0x23   :  { %138 = vsyncadd [#allocation5], 4294967168 }
  0x24   :  { %139 = dma.done.wait [#allocation8], 128  }
  0x25   :  { %140 = vsyncadd [#allocation8], 4294967168  ;;  %v40_v0 = vld [vmem:[#allocation7] sm:$0xff]  ;;  %s145_s7 = smov 32   ;;  %vm45_vm0 = vcmask 261120   ;;  %v47_v1 = vld [vmem:[#allocation4] sm:$0xff] }
  0x26   :  { %42 = vrot.lane.b32.xlu0 %v40_v0, %s145_s7  ;;  %s146_s8 = smov [#allocation9]   ;;  %vm49_vm1 = vcmask 523264  }
  0x27   :  { %s57_s9 = sshll.u32 %s146_s8, 4  ;;  %s58_s9 = int_to_ptr.vmem [resolvable:$true] %s57_s9 }
  0x28   :  { %s115_s10 = scalar_lea.vmem %s58_s9, 128  ;;  %p120_p3 = scmp.lt.s32.totalorder %s58_s9, %s58_s9 }
  0x29   :  { %p116_p2 = scmp.ne.s32.totalorder %s58_s9, %s115_s10  ;;  %p121_p4 = scmp.lt.s32.totalorder %s115_s10, %s115_s10 }
  0x2b   :  { %p122_p5 = por %p121_p4, %p120_p3 }
  0x2d   :  { %p123_p6 = pnand %p122_p5, %p116_p2 }
  0x98   :  { %v43_v2 = vpop.permute.xlu0 %42 }
  0x99   :  { %v46_v3 = vsel %vm45_vm0, %v40_v0, %v43_v2 }
  0x9a   :  { %v48_v4 = vadd.f32 %v47_v1, %v46_v3 }
  0x9c   :  { %50 = vst.msk [vmem:[#allocation9] sm:$0xff] %vm49_vm1, %v48_v4 }
  0x9d   :  { %126 = shalt.err (!%p123_p6)
}
  0x9e   :  { %s127_s12 = scalar_lea.hbm %s206_s3, 128 }
  0x9f   :  { %p128_p7 = scmp.ne.s32.totalorder %s206_s3, %s127_s12  ;;  %p131_p8 = scmp.lt.u32.totalorder %s127_s12, %s206_s3 }
  0xa1   :  { %p133_p9 = pnand %p131_p8, %p128_p7 }
  0xa3   :  { %136 = shalt.err (!%p133_p9)
}
  0xa4   :  { %60 = dma.vmem_to_hbm [thread:$0]  %s58_s9, 128, %s206_s3, [#allocation6]  }
  0xa5   :  { %141 = dma.done.wait [#allocation6], 128  }
  0xa6   :  { %142 = vsyncadd [#allocation6], 4294967168 }
  0xa7   :  { %64 = vsyncpa [#allocation5], 1 }
  0xa8   :  { %65 = vsyncpa [#allocation8], 1 }
  0xa9   :  { %66 = vsyncpa [#allocation6], 1 }

</bundles_post_ra>
